<compile_context>
chip_gen: v6e
topology: v6e:2x2x1
jax: 0.10.0
libtpu: 0.0.40
codegen_flags: <defaults>
</compile_context>

<pallas_src>
import functools

import jax
import jax.numpy as jnp
from jax.experimental import pallas as pl
from jax.experimental.pallas import tpu as pltpu


def _rgbhead_kernel(xb_ref, w_ref, b_ref, o_ref, *, K, TH, W, Cpad, pad):
    """One (batch, row-block) tile per grid step.

    xb_ref: (1, 1, Cpad, (TH+K-1)*W + 2*pad)  flattened row block (halo rows + flat slack)
    w_ref : (Cf, K*K*Cpad)                    scaled + reordered conv weights
    b_ref : (Cf, 1)                           conv bias
    o_ref : (1, Cf, TH*W)                     flat output tile (pixels on lanes)
    """
    L = TH * W
    # Column (position within an image row) of every output lane, used to zero the taps that
    # fall into the horizontal 'same' zero-padding.
    col = jax.lax.broadcasted_iota(jnp.int32, (Cpad, L), dimension=1) % W

    pieces = []
    for ky in range(K):
        for kx in range(K):
            s = kx - pad                               # horizontal shift of this tap
            start = ky * W + kx                        # flat offset into the padded block
            piece = xb_ref[0, 0, :, start:start + L]   # (Cpad, L) contiguous lane slice
            if s < 0:
                piece = jnp.where(col >= -s, piece, 0.0)
            elif s > 0:
                piece = jnp.where(col < W - s, piece, 0.0)
            pieces.append(piece)
    patches = jnp.concatenate(pieces, axis=0)           # (K*K*Cpad, L), sublane-aligned concat

    acc = jnp.dot(w_ref[...], patches, preferred_element_type=jnp.float32)  # (Cf, L)
    acc = acc + b_ref[...]                               # (Cf, 1) broadcasts over lanes
    o_ref[0] = acc.astype(o_ref.dtype)


def _pick_row_tile(H, W, *, vmem_budget_bytes=8 << 20):
    """Largest divisor of H whose flat tile is lane-aligned and fits a modest VMEM budget."""
    for th in range(H, 0, -1):
        if H % th == 0 and (th * W) % 128 == 0 and th * W * 4 * 64 <= vmem_budget_bytes:
            return th
    return H


def rgbhead_forward(x_nchw, weight_oihw, bias, *, kernel_size, row_tile=None):
    """x_nchw: (N, 3, H, W) f32, weight_oihw: (Cf, 3, K, K), bias: (Cf,). Returns (N, Cf, H, W)."""
    N, Cin, H, W = x_nchw.shape
    K = kernel_size
    assert K % 2 == 1, "RGBHead uses odd kernel sizes ('same' padding)"
    pad = K // 2
    Cf = weight_oihw.shape[0]
    Cpad = ((Cin + 7) // 8) * 8                          # pad channels to a full sublane group

    TH = _pick_row_tile(H, W) if row_tile is None else row_tile
    assert H % TH == 0, "row_tile must divide H"
    assert (TH * W) % 128 == 0 or TH == H, "flat tile must be lane-aligned"
    R = H // TH

    # Fold MeanShift (x/128) into the conv weights and reorder to match the im2col row order
    # (ky outer, kx middle, channel inner).
    w = (weight_oihw.astype(jnp.float32)) * (1.0 / 128.0)            # (Cf, Cin, K, K)
    w = jnp.transpose(w, (0, 2, 3, 1))                               # (Cf, K, K, Cin)
    w = jnp.pad(w, ((0, 0), (0, 0), (0, 0), (0, Cpad - Cin)))        # (Cf, K, K, Cpad)
    wmat = w.reshape(Cf, K * K * Cpad)
    bias2 = bias.astype(jnp.float32).reshape(Cf, 1)

    # Channel-pad + vertical zero-pad ('same' conv), build overlapping row blocks with a K-1
    # halo, flatten them row-major (stride = W) and add `pad` flat slack elements on each side
    # so every tap offset is an in-bounds contiguous slice.  All ops touch only the tiny input.
    xp = jnp.pad(x_nchw.astype(jnp.float32),
                 ((0, 0), (0, Cpad - Cin), (pad, pad), (0, 0)))       # (N, Cpad, H+2p, W)
    xb = jnp.stack([xp[:, :, r * TH: r * TH + TH + 2 * pad, :] for r in range(R)], axis=1)
    xb = xb.reshape(N, R, Cpad, (TH + 2 * pad) * W)
    xb = jnp.pad(xb, ((0, 0), (0, 0), (0, 0), (pad, pad)))            # (N, R, Cpad, Lblk)
    Lblk = (TH + 2 * pad) * W + 2 * pad

    kernel = functools.partial(_rgbhead_kernel, K=K, TH=TH, W=W, Cpad=Cpad, pad=pad)

    out_flat = pl.pallas_call(
        kernel,
        out_shape=jax.ShapeDtypeStruct((N, Cf, H * W), jnp.float32),
        grid_spec=pltpu.PrefetchScalarGridSpec(
            num_scalar_prefetch=0,
            grid=(N, R),
            in_specs=[
                pl.BlockSpec((1, 1, Cpad, Lblk), lambda n, r: (n, r, 0, 0)),
                pl.BlockSpec((Cf, K * K * Cpad), lambda n, r: (0, 0)),
                pl.BlockSpec((Cf, 1), lambda n, r: (0, 0)),
            ],
            out_specs=pl.BlockSpec((1, Cf, TH * W), lambda n, r: (n, 0, r)),
        ),
        compiler_params=pltpu.CompilerParams(
            dimension_semantics=("parallel", "parallel"),
            vmem_limit_bytes=32 * 1024 * 1024,
        ),
    )(xb, wmat, bias2)

    # Free, contiguous reshape back to the PyTorch NCHW output layout.
    return out_flat.reshape(N, Cf, H, W)


def _reference_forward(x_nchw, weight_oihw, bias, *, kernel_size):
    """Pure-JAX reference mirroring the PyTorch module (MeanShift /128 then 'same' conv)."""
    pad = kernel_size // 2
    y = jax.lax.conv_general_dilated(
        x_nchw.astype(jnp.float32) * (1.0 / 128.0), weight_oihw.astype(jnp.float32),
        window_strides=(1, 1), padding=((pad, pad), (pad, pad)),
        dimension_numbers=('NCHW', 'OIHW', 'NCHW'))
    return y + bias[None, :, None, None]


if __name__ == "__main__":
    # Small config consistent with RGBHead: Cin=3 (RGB), Cf=32, kernel_size=3.
    N, Cin, H, W = 2, 3, 16, 16
    Cf, K = 32, 3

    key = jax.random.PRNGKey(0)
    kx_, kw_, kb_ = jax.random.split(key, 3)

    fan_in = Cin * K * K
    weight = (jax.random.normal(kw_, (Cf, Cin, K, K), jnp.float32)
              / jnp.sqrt(jnp.float32(fan_in)))
    bias = jax.random.normal(kb_, (Cf,), jnp.float32) * 0.01
    x = jax.random.uniform(kx_, (N, Cin, H, W), jnp.float32, 0.0, 255.0)

    fwd = jax.jit(functools.partial(rgbhead_forward, kernel_size=K, row_tile=8))
    out = jax.block_until_ready(fwd(x, weight, bias))

    ref = _reference_forward(x, weight, bias, kernel_size=K)
    assert out.shape == (N, Cf, H, W)
    assert jnp.allclose(out, ref, atol=1e-4, rtol=1e-4), float(jnp.max(jnp.abs(out - ref)))

    print("KERNEL_OK")
</pallas_src>

<mosaic_0001>
module attributes {stable_mosaic.version = 11 : i64} {
  func.func @_rgbhead_kernel(%arg0: i32, %arg1: i32, %arg2: memref<1x1x8x162xf32, #tpu.memory_space<vmem>>, %arg3: memref<32x72xf32, #tpu.memory_space<vmem>>, %arg4: memref<32x1xf32, #tpu.memory_space<vmem>>, %arg5: memref<1x32x128xf32, #tpu.memory_space<vmem>>) attributes {dimension_semantics = [#tpu.dimension_semantics<parallel>, #tpu.dimension_semantics<parallel>], iteration_bounds = array<i64: 2, 2>, scalar_prefetch = 0 : i64, scratch_operands = 0 : i64, tpu.core_type = #tpu.core_type<tc>, window_params = [{transform_indices = @transform_0, window_bounds = array<i64: 1, 1, 8, 162>}, {pipeline_mode = #tpu.pipeline_mode<synchronous>, transform_indices = @transform_1, window_bounds = array<i64: 32, 72>}, {pipeline_mode = #tpu.pipeline_mode<synchronous>, transform_indices = @transform_2, window_bounds = array<i64: 32, 1>}, {transform_indices = @transform_3, window_bounds = array<i64: 1, 32, 128>}]} {
    %0 = tpu.iota {dimensions = array<i32: 1>} : vector<8x128xi32>
    %c16_i32 = arith.constant 16 : i32
    %c0_i32 = arith.constant 0 : i32
    %1 = arith.cmpi eq, %c16_i32, %c0_i32 : i32
    %c1_i32 = arith.constant 1 : i32
    %2 = arith.select %1, %c1_i32, %c16_i32 : i32
    %3 = vector.broadcast %2 : i32 to vector<8x128xi32>
    %4 = arith.remsi %0, %3 : vector<8x128xi32>
    %c0_i32_0 = arith.constant 0 : i32
    %5 = vector.broadcast %c0_i32_0 : i32 to vector<8x128xi32>
    %6 = arith.cmpi ne, %4, %5 : vector<8x128xi32>
    %c0_i32_1 = arith.constant 0 : i32
    %7 = vector.broadcast %c0_i32_1 : i32 to vector<8x128xi32>
    %8 = arith.cmpi slt, %4, %7 : vector<8x128xi32>
    %c0_i32_2 = arith.constant 0 : i32
    %9 = arith.cmpi slt, %2, %c0_i32_2 : i32
    %10 = vector.broadcast %9 : i1 to vector<8x128xi1>
    %11 = vector.broadcast %10 : vector<8x128xi1> to vector<8x128xi1>
    %12 = arith.xori %8, %11 : vector<8x128xi1>
    %13 = arith.andi %12, %6 : vector<8x128xi1>
    %14 = vector.broadcast %2 : i32 to vector<8x128xi32>
    %15 = arith.addi %4, %14 : vector<8x128xi32>
    %16 = arith.select %13, %15, %4 : vector<8x128xi1>, vector<8x128xi32>
    %c0 = arith.constant 0 : index
    %c0_3 = arith.constant 0 : index
    %c0_4 = arith.constant 0 : index
    %c0_5 = arith.constant 0 : index
    %17 = vector.load %arg2[%c0, %c0_3, %c0_4, %c0_5] : memref<1x1x8x162xf32, #tpu.memory_space<vmem>>, vector<1x1x8x128xf32>
    %18 = vector.shape_cast %17 : vector<1x1x8x128xf32> to vector<8x128xf32>
    %c1_i32_6 = arith.constant 1 : i32
    %19 = vector.broadcast %c1_i32_6 : i32 to vector<8x128xi32>
    %20 = arith.cmpi sge, %16, %19 : vector<8x128xi32>
    %cst = arith.constant 0.000000e+00 : f32
    %21 = vector.broadcast %cst : f32 to vector<8x128xf32>
    %22 = arith.select %20, %18, %21 : vector<8x128xi1>, vector<8x128xf32>
    %c0_7 = arith.constant 0 : index
    %c0_8 = arith.constant 0 : index
    %c0_9 = arith.constant 0 : index
    %c1 = arith.constant 1 : index
    %23 = vector.load %arg2[%c0_7, %c0_8, %c0_9, %c1] : memref<1x1x8x162xf32, #tpu.memory_space<vmem>>, vector<1x1x8x128xf32>
    %24 = vector.shape_cast %23 : vector<1x1x8x128xf32> to vector<8x128xf32>
    %c0_10 = arith.constant 0 : index
    %c0_11 = arith.constant 0 : index
    %c0_12 = arith.constant 0 : index
    %c2 = arith.constant 2 : index
    %25 = vector.load %arg2[%c0_10, %c0_11, %c0_12, %c2] : memref<1x1x8x162xf32, #tpu.memory_space<vmem>>, vector<1x1x8x128xf32>
    %26 = vector.shape_cast %25 : vector<1x1x8x128xf32> to vector<8x128xf32>
    %c15_i32 = arith.constant 15 : i32
    %27 = vector.broadcast %c15_i32 : i32 to vector<8x128xi32>
    %28 = arith.cmpi slt, %16, %27 : vector<8x128xi32>
    %cst_13 = arith.constant 0.000000e+00 : f32
    %29 = vector.broadcast %cst_13 : f32 to vector<8x128xf32>
    %30 = arith.select %28, %26, %29 : vector<8x128xi1>, vector<8x128xf32>
    %c0_14 = arith.constant 0 : index
    %c0_15 = arith.constant 0 : index
    %c0_16 = arith.constant 0 : index
    %c16 = arith.constant 16 : index
    %31 = vector.load %arg2[%c0_14, %c0_15, %c0_16, %c16] : memref<1x1x8x162xf32, #tpu.memory_space<vmem>>, vector<1x1x8x128xf32>
    %32 = vector.shape_cast %31 : vector<1x1x8x128xf32> to vector<8x128xf32>
    %c1_i32_17 = arith.constant 1 : i32
    %33 = vector.broadcast %c1_i32_17 : i32 to vector<8x128xi32>
    %34 = arith.cmpi sge, %16, %33 : vector<8x128xi32>
    %cst_18 = arith.constant 0.000000e+00 : f32
    %35 = vector.broadcast %cst_18 : f32 to vector<8x128xf32>
    %36 = arith.select %34, %32, %35 : vector<8x128xi1>, vector<8x128xf32>
    %c0_19 = arith.constant 0 : index
    %c0_20 = arith.constant 0 : index
    %c0_21 = arith.constant 0 : index
    %c17 = arith.constant 17 : index
    %37 = vector.load %arg2[%c0_19, %c0_20, %c0_21, %c17] : memref<1x1x8x162xf32, #tpu.memory_space<vmem>>, vector<1x1x8x128xf32>
    %38 = vector.shape_cast %37 : vector<1x1x8x128xf32> to vector<8x128xf32>
    %c0_22 = arith.constant 0 : index
    %c0_23 = arith.constant 0 : index
    %c0_24 = arith.constant 0 : index
    %c18 = arith.constant 18 : index
    %39 = vector.load %arg2[%c0_22, %c0_23, %c0_24, %c18] : memref<1x1x8x162xf32, #tpu.memory_space<vmem>>, vector<1x1x8x128xf32>
    %40 = vector.shape_cast %39 : vector<1x1x8x128xf32> to vector<8x128xf32>
    %c15_i32_25 = arith.constant 15 : i32
    %41 = vector.broadcast %c15_i32_25 : i32 to vector<8x128xi32>
    %42 = arith.cmpi slt, %16, %41 : vector<8x128xi32>
    %cst_26 = arith.constant 0.000000e+00 : f32
    %43 = vector.broadcast %cst_26 : f32 to vector<8x128xf32>
    %44 = arith.select %42, %40, %43 : vector<8x128xi1>, vector<8x128xf32>
    %c0_27 = arith.constant 0 : index
    %c0_28 = arith.constant 0 : index
    %c0_29 = arith.constant 0 : index
    %c32 = arith.constant 32 : index
    %45 = vector.load %arg2[%c0_27, %c0_28, %c0_29, %c32] : memref<1x1x8x162xf32, #tpu.memory_space<vmem>>, vector<1x1x8x128xf32>
    %46 = vector.shape_cast %45 : vector<1x1x8x128xf32> to vector<8x128xf32>
    %c1_i32_30 = arith.constant 1 : i32
    %47 = vector.broadcast %c1_i32_30 : i32 to vector<8x128xi32>
    %48 = arith.cmpi sge, %16, %47 : vector<8x128xi32>
    %cst_31 = arith.constant 0.000000e+00 : f32
    %49 = vector.broadcast %cst_31 : f32 to vector<8x128xf32>
    %50 = arith.select %48, %46, %49 : vector<8x128xi1>, vector<8x128xf32>
    %c0_32 = arith.constant 0 : index
    %c0_33 = arith.constant 0 : index
    %c0_34 = arith.constant 0 : index
    %c33 = arith.constant 33 : index
    %51 = vector.load %arg2[%c0_32, %c0_33, %c0_34, %c33] : memref<1x1x8x162xf32, #tpu.memory_space<vmem>>, vector<1x1x8x128xf32>
    %52 = vector.shape_cast %51 : vector<1x1x8x128xf32> to vector<8x128xf32>
    %c0_35 = arith.constant 0 : index
    %c0_36 = arith.constant 0 : index
    %c0_37 = arith.constant 0 : index
    %c34 = arith.constant 34 : index
    %53 = vector.load %arg2[%c0_35, %c0_36, %c0_37, %c34] : memref<1x1x8x162xf32, #tpu.memory_space<vmem>>, vector<1x1x8x128xf32>
    %54 = vector.shape_cast %53 : vector<1x1x8x128xf32> to vector<8x128xf32>
    %c15_i32_38 = arith.constant 15 : i32
    %55 = vector.broadcast %c15_i32_38 : i32 to vector<8x128xi32>
    %56 = arith.cmpi slt, %16, %55 : vector<8x128xi32>
    %cst_39 = arith.constant 0.000000e+00 : f32
    %57 = vector.broadcast %cst_39 : f32 to vector<8x128xf32>
    %58 = arith.select %56, %54, %57 : vector<8x128xi1>, vector<8x128xf32>
    %59 = tpu.concatenate %22, %24, %30, %36, %38, %44, %50, %52, %58 in 0 : vector<8x128xf32>, vector<8x128xf32>, vector<8x128xf32>, vector<8x128xf32>, vector<8x128xf32>, vector<8x128xf32>, vector<8x128xf32>, vector<8x128xf32>, vector<8x128xf32> -> vector<72x128xf32>
    %c0_40 = arith.constant 0 : index
    %c0_41 = arith.constant 0 : index
    %60 = vector.load %arg3[%c0_40, %c0_41] : memref<32x72xf32, #tpu.memory_space<vmem>>, vector<32x72xf32>
    %cst_42 = arith.constant dense<0.000000e+00> : vector<32x128xf32>
    %61 = tpu.matmul %60, %59, %cst_42 {dimension_numbers = #tpu.dot_dimension_numbers<[1], [0], [0], [1], [0, 0, 1, 1], [], []>} : vector<32x72xf32>, vector<72x128xf32>, vector<32x128xf32> -> vector<32x128xf32>
    %c0_43 = arith.constant 0 : index
    %c0_44 = arith.constant 0 : index
    %62 = vector.load %arg4[%c0_43, %c0_44] : memref<32x1xf32, #tpu.memory_space<vmem>>, vector<32x1xf32>
    %63 = vector.broadcast %62 : vector<32x1xf32> to vector<32x128xf32>
    %64 = arith.addf %61, %63 : vector<32x128xf32>
    %c0_45 = arith.constant 0 : index
    %c0_46 = arith.constant 0 : index
    %c0_47 = arith.constant 0 : index
    %65 = vector.load %arg5[%c0_45, %c0_46, %c0_47] : memref<1x32x128xf32, #tpu.memory_space<vmem>>, vector<1x32x128xf32>
    %66 = vector.shape_cast %65 : vector<1x32x128xf32> to vector<32x128xf32>
    %67 = vector.shape_cast %64 : vector<32x128xf32> to vector<1x32x128xf32>
    tpu.vector_store %arg5[%c0_45, %c0_46, %c0_47], %67 {strides = array<i32>} : memref<1x32x128xf32, #tpu.memory_space<vmem>>, vector<1x32x128xf32>,
    return
  }
  func.func @transform_0(%arg0: i32, %arg1: i32) -> (i32, i32, i32, i32) {
    %c0_i32 = arith.constant 0 : i32
    %c0_i32_0 = arith.constant 0 : i32
    %c0_i32_1 = arith.constant 0 : i32
    return %arg0, %arg1, %c0_i32, %c0_i32_0 : i32, i32, i32, i32
  }
  func.func @transform_1(%arg0: i32, %arg1: i32) -> (i32, i32) {
    %c0_i32 = arith.constant 0 : i32
    %c0_i32_0 = arith.constant 0 : i32
    %c0_i32_1 = arith.constant 0 : i32
    return %c0_i32, %c0_i32_0 : i32, i32
  }
  func.func @transform_2(%arg0: i32, %arg1: i32) -> (i32, i32) {
    %c0_i32 = arith.constant 0 : i32
    %c0_i32_0 = arith.constant 0 : i32
    %c0_i32_1 = arith.constant 0 : i32
    return %c0_i32, %c0_i32_0 : i32, i32
  }
  func.func @transform_3(%arg0: i32, %arg1: i32) -> (i32, i32, i32) {
    %c0_i32 = arith.constant 0 : i32
    %c0_i32_0 = arith.constant 0 : i32
    return %arg0, %c0_i32, %arg1 : i32, i32, i32
  }
}

</mosaic_0001>

<bundles_post_ra>
// kernel: rgbhead_forward.1
= control target key start
LH: loop header
LB: loop body
LE: loop exit
PB: predicated region body
PF: predicated region fallthrough
CT: control target
= control target key end

     0   :  { %s765_s12 = smov 0   ;;  %s767_s13 = smov 0   ;;  %s958_s0 = inlined_call_operand.vmem [shape: f32[2,2,8,162], index: 0, kind: input, shape index: {}]   ;;  %s959_s1 = inlined_call_operand.vmem [shape: f32[32,72], index: 1, kind: input, shape index: {}]   ;;  %s960_s2 = inlined_call_operand.vmem [shape: f32[32,1], index: 2, kind: input, shape index: {}]   ;;  %s961_s3 = inlined_call_operand.vmem [shape: f32[2,32,256], index: 3, kind: output, shape index: {}]  }
   0x1   :  { %s769_s14 = smov 0   ;;  %s771_s15 = smov 0  }
   0x2   :  { %s773_s16 = smov 0   ;;  %s775_s17 = smov 0  }
   0x3   :  { %s777_s18 = smov 0  }
   0x4 LB: > { %s22_s19 = sadd.s32 1, %s726_s16  ;;  %s25_s20 = sadd.s32 1, %s730_s17  ;;  %s734_s18 = sphi %s777_s18, %s13_s18   ;;  %s730_s17 = sphi %s775_s17, %s972_s17   ;;  %s726_s16 = sphi %s773_s16, %s971_s16   ;;  %s722_s15 = sphi %s771_s15, %s970_s15   ;;  %s718_s14 = sphi %s769_s14, %s969_s14   ;;  %s714_s13 = sphi %s767_s13, %s968_s13   ;;  %s710_s12 = sphi %s765_s12, %s967_s12  }
   0x5   : > { %p23_p0 = scmp.ge.s32.totalorder %s22_s19, 2  ;;  %s534_s21 = sadd.s32 4294967295, %s734_s18  }
   0x6   : > { %p114_p1 = scmp.ne.s32.totalorder %s714_s13, %s710_s12  ;;  %p115_p2 = scmp.eq.s32.totalorder %s534_s21, 3 }
   0x7   : > { %s974_s19 = smov (%p23_p0, %s22_s19), 0  ;;  %s976_s20 = smov (!%p23_p0, %s25_s20), %s730_s17 }
   0x8   : > { %s100_s22 = ssub.s32 %s726_s16, %s974_s19  ;;  %p27_p3 = scmp.ge.s32.totalorder %s976_s20, 2 }
   0x9   : > { %p538_p4 = scmp.ge.s32.totalorder %s734_s18, 1  ;;  %p811_p5 = por %p115_p2, %p114_p1 }
   0xa   : > { %p157_p6 = scmp.lt.s32.totalorder %s734_s18, 5  ;;  %s978_s20 = smov (%p27_p3, %s976_s20), 0 }
   0xb   : > { %s99_s24 = ssub.s32 %s730_s17, %s978_s20  ;;  %s104_s26 = sadd.s32 1, %s714_s13 }
   0xc   : > { %p158_p7 = pnand %p538_p4, %p157_p6  ;;  %s101_s25 = sor.u32 %s100_s22, %s99_s24 }
   0xd   : > { %p102_p8 = scmp.eq.s32.totalorder %s101_s25, 0  ;;  %p184_p9 = scmp.lt.s32.totalorder (!%p158_p7), %s722_s15, 1 }
   0xe   : > { %161 = sbr.rel (%p158_p7) target bundleno = 381 (0x17d), region = 32  ;;  %p186_p10 = scmp.lt.s32.totalorder (!%p158_p7), %s718_s14, 1 }
   0xf   : > { %s822_s27 = scalar_select %p102_p8, %s714_s13, %s104_s26  }
  0x10   : > { %s736_s10 = smov (!%p158_p7), 95   ;;  %s737_s11 = smov (!%p158_p7), 94  }
  0x11   : > { %s738_s21 = smov (!%p158_p7), 96   ;;  %s739_s22 = smov (!%p158_p7), 110  }
  0x12   : > { %s740_s24 = smov (!%p158_p7), 111  }
  0x13   : > { %s185_s28 = scalar_select %p184_p9, %s722_s15, 1  ;;  %v275_v2 = vld [vmem:[%s959_s1] sm:$0xff]  ;;  %vm303_vm0 = vcmask 588800   ;;  %v277_v3 = vld [vmem:[%s959_s1 + $0x10] sm:$0xff]  ;;  %v742_v4 = vmov 0   ;;  %v280_v5 = vld [vmem:[%s960_s2 + $0x8] sm:$0xff]  ;;  %v193_v9 = vlaneseq }
  0x14   : > { %s187_s29 = scalar_select %p186_p10, %s718_s14, 1  ;;  %589 = vmatprep.mubr.msk.f32.mxu0 %vm303_vm0, %v275_v2  ;;  %592 = vmatprep.mubr.msk.f32.mxu1 %vm303_vm0, %v277_v3  ;;  %v279_v6 = vld [vmem:[%s960_s2] sm:$0xff]  ;;  %v281_v7 = vld [vmem:[%s960_s2 + $0x10] sm:$0xff]  ;;  %v282_v8 = vld [vmem:[%s960_s2 + $0x18] sm:$0xff]  ;;  %vm250_vm1 = vcmask 769024   ;;  %vm272_vm3 = vcmask 777216  }
  0x15   : > { %s541_s30 = sshll.u32 %s185_s28, 2  ;;  %679 = vset.pattern.permute.xlu1 %v742_v4  ;;  %678 = vset.pattern.permute.xlu0 %v742_v4  ;;  %v194_v10 = vand.u32 127, %v193_v9  ;;  %vm242_vm4 = vcmask 785408   ;;  %vm234_vm6 = vcmask 900096   ;;  %vm265_vm7 = vcmask 908288   ;;  %v276_v38 = vld [vmem:[%s959_s1 + $0x8] sm:$0xff] }
  0x16   : > { %s540_s4 = sshll.u32 %s187_s29, 1  ;;  %vm226_vm8 = vcmask 916480   ;;  %vm218_vm9 = vcmask 1031168   ;;  %vm258_vm10 = vcmask 1039360   ;;  %v278_v39 = vld [vmem:[%s959_s1 + $0x18] sm:$0xff]  ;;  %s181_s29 = sand.u32 1, %s710_s12  }
  0x17   : > { %s190_s5 = sadd.s32 %s541_s30, %s540_s4  ;;  %s741_s30 = smov 112   ;;  %v199_v11 = vand.u32 15, %v194_v10 }
  0x18   : > { %s542_s6 = sshll.u32 %s190_s5, 3  ;;  %s743_s4 = smov 126  }
  0x19   : > { %s192_s9 = scalar_lea.vmem %s958_s0, %s542_s6  ;;  %s744_s5 = smov 127   ;;  %vm861_vm2 = vcmp.lt.s32.totalorder %v199_v11, 15  ;;  %vm873_vm5 = vcmp.ge.s32.totalorder %v199_v11, 1 }
  0x1a   : > { %v831_v0 = vld [vmem:[%s192_s9] sm:$0xff]  ;;  %v210_v1 = vld [vmem:[%s192_s9 + $0x8] sm:$0xff]  ;;  %s554_s12 = sshll.u32 (%p811_p5), %s722_s15, 3 }
  0x1b   : > { %268 = vrot.lane.b32.xlu1 %v831_v0, %s736_s10  ;;  %246 = vrot.lane.b32.xlu0 %v831_v0, %s737_s11 }
  0x1f   : > { %270 = vrot.lane.b32.xlu1 %v210_v1, %s736_s10  ;;  %248 = vrot.lane.b32.xlu0 %v210_v1, %s737_s11 }
  0x23   : > { %240 = vrot.lane.b32.xlu1 %v210_v1, %s738_s21  ;;  %238 = vrot.lane.b32.xlu0 %v831_v0, %s738_s21 }
  0x27   : > { %232 = vrot.lane.b32.xlu1 %v210_v1, %s739_s22  ;;  %230 = vrot.lane.b32.xlu0 %v831_v0, %s739_s22 }
  0x2b   : > { %263 = vrot.lane.b32.xlu1 %v210_v1, %s740_s24  ;;  %261 = vrot.lane.b32.xlu0 %v831_v0, %s740_s24 }
  0x2f   : > { %224 = vrot.lane.b32.xlu1 %v210_v1, %s741_s30  ;;  %222 = vrot.lane.b32.xlu0 %v831_v0, %s741_s30  ;;  %s539_s30 = sshll.u32 %s181_s29, 5 }
  0x33   : > { %216 = vrot.lane.b32.xlu1 %v210_v1, %s743_s4  ;;  %214 = vrot.lane.b32.xlu0 %v831_v0, %s743_s4  ;;  %s183_s4 = scalar_lea.vmem [#allocation2], %s539_s30 }
  0x37   : > { %256 = vrot.lane.b32.xlu1 %v210_v1, %s744_s5  ;;  %254 = vrot.lane.b32.xlu0 %v831_v0, %s744_s5  ;;  %s413_s5 = sadd.s32 (%p811_p5), %s718_s14, %s554_s12 }
  0x38   : > { %s555_s6 = sshll.u32 (%p811_p5), %s413_s5, 3 }
  0x39   : > { %s415_s9 = scalar_lea.vmem (%p811_p5), %s961_s3, %s555_s6 }
  0x3b   : > { %290 = vperm.xlu1 %679, %v280_v5   ;;  %285 = vperm.xlu0 %678, %v279_v6  }
  0x3f   : > { %295 = vperm.xlu1 %679, %v281_v7   ;;  %300 = vperm.xlu0 %678, %v282_v8  }
  0x8d   : > { %v269_v12 = vpop.permute.xlu1 %268  ;;  %v247_v13 = vpop.permute.xlu0 %246 }
  0x91   : > { %v271_v15 = vpop.permute.xlu1 %270  ;;  %v249_v16 = vpop.permute.xlu0 %248 }
  0x92   : > { %v251_v17 = vsel %vm250_vm1, %v247_v13, %v249_v16  ;;  %v273_v18 = vsel %vm272_vm3, %v269_v12, %v271_v15 }
  0x93   : > { %571 = vmatprep.subr.msk.mxu0 %vm861_vm2, %v251_v17  ;;  %595 = vmatprep.subr.msk.mxu1 %vm861_vm2, %v251_v17 }
  0x94   : > { %572 = vmatpush3.msk.msra.mxu0 %vm861_vm2, %v251_v17  ;;  %604 = vmatpush3.msk.msra.mxu1 %vm861_vm2, %v251_v17 }
  0x95   : > { %v241_v20 = vpop.permute.xlu1 %240  ;;  %573 = vmatprep.subr.mxu0 %v273_v18  ;;  %596 = vmatprep.subr.mxu1 %v273_v18  ;;  %v239_v21 = vpop.permute.xlu0 %238 }
  0x96   : > { %v243_v22 = vsel %vm242_vm4, %v239_v21, %v241_v20  ;;  %574 = vmatpush3.msra.mxu0 %v273_v18  ;;  %605 = vmatpush3.msra.mxu1 %v273_v18 }
  0x97   : > { %575 = vmatprep.subr.msk.mxu0 %vm873_vm5, %v243_v22  ;;  %597 = vmatprep.subr.msk.mxu1 %vm873_vm5, %v243_v22 }
  0x98   : > { %576 = vmatpush3.msk.msra.mxu0 %vm873_vm5, %v243_v22  ;;  %606 = vmatpush3.msk.msra.mxu1 %vm873_vm5, %v243_v22 }
  0x99   : > { %v233_v23 = vpop.permute.xlu1 %232  ;;  %v231_v24 = vpop.permute.xlu0 %230 }
  0x9a   : > { %v235_v25 = vsel %vm234_vm6, %v231_v24, %v233_v23 }
  0x9b   : > { %577 = vmatprep.subr.msk.mxu0 %vm861_vm2, %v235_v25  ;;  %598 = vmatprep.subr.msk.mxu1 %vm861_vm2, %v235_v25 }
  0x9c   : > { %578 = vmatpush3.msk.msra.mxu0 %vm861_vm2, %v235_v25  ;;  %607 = vmatpush3.msk.msra.mxu1 %vm861_vm2, %v235_v25 }
  0x9d   : > { %v264_v26 = vpop.permute.xlu1 %263  ;;  %v262_v27 = vpop.permute.xlu0 %261 }
  0x9e   : > { %v266_v28 = vsel %vm265_vm7, %v262_v27, %v264_v26 }
  0x9f   : > { %579 = vmatprep.subr.mxu0 %v266_v28  ;;  %599 = vmatprep.subr.mxu1 %v266_v28 }
  0xa0   : > { %580 = vmatpush3.msra.mxu0 %v266_v28  ;;  %608 = vmatpush3.msra.mxu1 %v266_v28 }
  0xa1   : > { %v225_v29 = vpop.permute.xlu1 %224  ;;  %v223_v30 = vpop.permute.xlu0 %222 }
  0xa2   : > { %v227_v31 = vsel %vm226_vm8, %v223_v30, %v225_v29 }
  0xa3   : > { %581 = vmatprep.subr.msk.mxu0 %vm873_vm5, %v227_v31  ;;  %600 = vmatprep.subr.msk.mxu1 %vm873_vm5, %v227_v31 }
  0xa4   : > { %582 = vmatpush3.msk.msra.mxu0 %vm873_vm5, %v227_v31  ;;  %609 = vmatpush3.msk.msra.mxu1 %vm873_vm5, %v227_v31 }
  0xa5   : > { %v217_v32 = vpop.permute.xlu1 %216  ;;  %v215_v33 = vpop.permute.xlu0 %214 }
  0xa6   : > { %v219_v34 = vsel %vm218_vm9, %v215_v33, %v217_v32 }
  0xa7   : > { %583 = vmatprep.subr.msk.mxu0 %vm861_vm2, %v219_v34  ;;  %601 = vmatprep.subr.msk.mxu1 %vm861_vm2, %v219_v34 }
  0xa8   : > { %584 = vmatpush3.msk.msra.mxu0 %vm861_vm2, %v219_v34  ;;  %610 = vmatpush3.msk.msra.mxu1 %vm861_vm2, %v219_v34 }
  0xa9   : > { %v257_v35 = vpop.permute.xlu1 %256  ;;  %v255_v36 = vpop.permute.xlu0 %254 }
  0xaa   : > { %v259_v37 = vsel %vm258_vm10, %v255_v36, %v257_v35 }
  0xab   : > { %585 = vmatprep.subr.mxu0 %v259_v37  ;;  %602 = vmatprep.subr.mxu1 %v259_v37 }
  0xac   : > { %586 = vmatpush3.msra.mxu0 %v259_v37  ;;  %611 = vmatpush3.msra.mxu1 %v259_v37 }
  0xad   : > { %587 = vmatprep.subr.msk.mxu0 %vm873_vm5, %v831_v0  ;;  %603 = vmatprep.subr.msk.mxu1 %vm873_vm5, %v831_v0 }
  0xae   : > { %588 = vmatpush3.msk.msra.mxu0 %vm873_vm5, %v831_v0  ;;  %612 = vmatpush3.msk.msra.mxu1 %vm873_vm5, %v831_v0 }
  0xaf   : > { %590 = vmatmul.mubr.msk.f32.vlgmr.msra.gmra.mxu0 %vm303_vm0, %v276_v38  ;;  %593 = vmatmul.mubr.msk.f32.vlgmr.msra.gmra.mxu1 %vm303_vm0, %v278_v39 }
  0xb6   : > { %v286_v40 = vpop.permute.xlu0 %285  ;;  %v291_v41 = vpop.permute.xlu1 %290 }
  0xba   : > { %v301_v42 = vpop.permute.xlu0 %300  ;;  %v296_v45 = vpop.permute.xlu1 %295 }
 0x16f   : > { %v591_v43 = vpop.f32.mrf.mxu0  ;;  %v594_v44 = vpop.f32.mrf.mxu1 }
 0x170   : > { %v388_v46 = vadd.f32 %v591_v43, %v291_v41  ;;  %v398_v47 = vadd.f32 %v594_v44, %v301_v42  ;;  %411 = sbr.rel (!%p811_p5) target bundleno = 381 (0x17d), region = 36 }
 0x171   : > { %v382_v48 = vpop.f32.mrf.mxu0  ;;  %v392_v49 = vpop.f32.mrf.mxu1 }
 0x172   : > { %402 = vst [vmem:[%s183_s4 + $0x8] sm:$0xff] %v388_v46  ;;  %404 = vst [vmem:[%s183_s4 + $0x18] sm:$0xff] %v398_v47  ;;  %v383_v50 = vadd.f32 %v382_v48, %v286_v40  ;;  %v393_v51 = vadd.f32 %v392_v49, %v296_v45 }
 0x174   : > { %401 = vst [vmem:[%s183_s4] sm:$0xff] %v383_v50  ;;  %403 = vst [vmem:[%s183_s4 + $0x10] sm:$0xff] %v393_v51 }
 0x179   : > { %v452_v53 = vld [vmem:[%s183_s4 + $0x8] sm:$0xff]  ;;  %v456_v55 = vld [vmem:[%s183_s4 + $0x18] sm:$0xff] }
 0x17a   : > { %453 = vst [vmem:[%s415_s9 + $0x10] sm:$0xff] %v452_v53  ;;  %457 = vst [vmem:[%s415_s9 + $0x30] sm:$0xff] %v456_v55 }
 0x17b   : > { %v450_v52 = vld [vmem:[%s183_s4] sm:$0xff]  ;;  %v454_v54 = vld [vmem:[%s183_s4 + $0x10] sm:$0xff] }
 0x17c   : > { %451 = vst [vmem:[%s415_s9] sm:$0xff] %v450_v52  ;;  %455 = vst [vmem:[%s415_s9 + $0x20] sm:$0xff] %v454_v54 }
 0x17d PF: > { %s13_s18 = sadd.s32 1, %s734_s18   ;;  %s967_s12 = smov %s714_s13 }
 0x17e   : > { %p10_p11 = scmp.ge.s32.totalorder %s13_s18, 6   ;;  %s968_s13 = smov %s822_s27 }
 0x17f   : > { %s969_s14 = smov %s726_s16  ;;  %s970_s15 = smov %s730_s17 }
 0x180   : > { %s971_s16 = smov %s974_s19  ;;  %s972_s17 = smov %s978_s20 }
 0x181   :  { %12 = sbr.rel (!%p10_p11) target bundleno = 4 (0x4), region = 100 }

</bundles_post_ra>
